<compile_context>
chip_gen: v5e
topology: v5e:2x2
jax: 0.10.0
libtpu: 0.0.40
codegen_flags: <defaults>
</compile_context>

<pallas_src>
import functools

import jax
import jax.numpy as jnp
from jax.experimental import pallas as pl
from jax.experimental.pallas import tpu as pltpu


def _softmax_last(a, *, exp_dtype=jnp.float32, out_dtype=jnp.float32,
                  approx_recip=False):
    """Row softmax over the last axis.

    exp_dtype:   dtype the exp runs in (bf16 doubles EUP throughput on v6e/v7x).
    out_dtype:   dtype of the returned slab (bf16 feeds the MXU directly, so no
                 separate full-slab cast pass and no coexisting f32 copy).
    approx_recip: use the approximate EUP reciprocal for the 1/rowsum.
    """
    m = jnp.max(a, axis=-1, keepdims=True)
    e = jnp.exp((a - m).astype(exp_dtype))
    s = jnp.sum(e, axis=-1, keepdims=True, dtype=jnp.float32)
    r = pl.reciprocal(s, approx=True) if approx_recip else 1.0 / s
    return (e * r.astype(e.dtype)).astype(out_dtype)


def _pam_kernel(x_ref, kt_ref, wq_ref, bq_ref, wv_ref, bv_ref, gamma_ref,
                out_ref, q_sc, vsm_sc, acc_sc, *, tile_n, mxu_dtype,
                attn_exp_dtype):
    t = pl.program_id(1)
    n_tiles = pl.num_programs(1)

    # ---- once per batch element: fused query / value 1x1 convs --------------
    @pl.when(t == 0)
    def _init():
        x = x_ref[...]                                              # (C, N) f32
        q = jnp.dot(wq_ref[...], x,
                    preferred_element_type=jnp.float32) + bq_ref[...]
        q_sc[...] = q.astype(mxu_dtype)                             # (Cq, N)
        v = jnp.dot(wv_ref[...], x,
                    preferred_element_type=jnp.float32) + bv_ref[...]
        # Value softmax: f32 exp + exact reciprocal (C rows, once per batch),
        # written straight into MXU-dtype scratch (no f32 vsm copy kept).
        vsm_sc[...] = _softmax_last(v, exp_dtype=jnp.float32,
                                    out_dtype=mxu_dtype, approx_recip=False)
        acc_sc[...] = jnp.zeros_like(acc_sc)

    # ---- one (TILE_N, N) strip of attention rows -----------------------------
    start = pl.multiple_of(t * tile_n, tile_n)
    kt_strip = kt_ref[pl.ds(start, tile_n), :]                      # (TILE_N, Cq) bf16
    # kt already holds -K^T, so this standard bf16 contraction is -E directly.
    neg_energy = jnp.dot(kt_strip, q_sc[...],
                         preferred_element_type=jnp.float32)        # (TILE_N, N) f32
    attention = _softmax_last(neg_energy, exp_dtype=attn_exp_dtype,
                              out_dtype=mxu_dtype, approx_recip=True)
    vsm_strip = vsm_sc[:, pl.ds(start, tile_n)]                     # (C, TILE_N) bf16
    acc_sc[...] += jnp.dot(vsm_strip, attention,
                           preferred_element_type=jnp.float32)      # (C, N) f32

    # ---- last strip: final softmax + residual --------------------------------
    @pl.when(t == n_tiles - 1)
    def _finalize():
        # Final softmax feeds the residual: f32 exp, exact division.
        out = _softmax_last(acc_sc[...], exp_dtype=jnp.float32,
                            out_dtype=jnp.float32, approx_recip=False)
        out_ref[...] = (x_ref[...] + gamma_ref[0, 0] * out).astype(out_ref.dtype)


def _vmem_capacity_bytes():
    try:
        return int(pltpu.get_tpu_info().vmem_capacity_bytes)
    except Exception:
        return 64 * 2**20            # conservative (v7x-sized) fallback


def _default_attn_exp_dtype(mxu_dtype):
    if jnp.dtype(mxu_dtype) != jnp.dtype(jnp.bfloat16):
        return jnp.float32           # full-precision mode requested
    try:
        kind = jax.devices()[0].device_kind.lower()
    except Exception:
        return jnp.float32
    # v6e / v7x have a bf16 EUP (exp); v5e and older do not.
    if ("v6" in kind) or ("v7" in kind) or ("tpu7" in kind):
        return jnp.bfloat16
    return jnp.float32


def _pick_tile_n(n, strip_budget_bytes, cap=512):
    """Largest divisor of N that (a) is <= cap, (b) keeps the per-strip slabs
    (~10 * TILE_N * N bytes: f32 energy + exp temp + bf16 attention + slack)
    inside the budget, and (c) is a multiple of 128 when possible so per-strip
    slices stay lane/sublane aligned."""
    bytes_per_row = 10 * n
    max_rows = max(strip_budget_bytes // bytes_per_row, 8)
    cap = int(max(min(cap, max_rows, n), 1))
    best_aligned, best_any = 0, 0
    for t in range(1, cap + 1):
        if n % t == 0:
            best_any = t
            if t % 128 == 0:
                best_aligned = t
    if best_aligned:
        return best_aligned
    return best_any if best_any else n


def pam_module(x, wq, bq, wk, bk, wv, bv, gamma, *, tile_n=None,
               mxu_dtype=jnp.bfloat16, attn_exp_dtype=None,
               out_single_buffer=False):
    """PAM_Module.forward.  x: (B, C, H, W) f32; wq/wk: (C//2, C); bq/bk:
    (C//2, 1); wv: (C, C); bv: (C, 1); gamma: scalar-like."""
    B, C, H, W = x.shape
    N = H * W
    Cq = wq.shape[0]
    x_flat = x.reshape(B, C, N)
    gamma = jnp.asarray(gamma, jnp.float32).reshape(1, 1)
    if attn_exp_dtype is None:
        attn_exp_dtype = _default_attn_exp_dtype(mxu_dtype)

    # Pre-negated, pre-transposed key projection (-K^T), built by XLA in the
    # wrapper where transposes are free, streamed into the kernel as bf16.
    kt_neg = (jnp.einsum('oc,bcn->bno', -wk, x_flat)
              - bk[:, 0][None, None, :]).astype(mxu_dtype)          # (B, N, Cq)

    mxu_bytes = jnp.dtype(mxu_dtype).itemsize
    f32 = 4

    # VMEM budget from the actual chip (v5e/v6e: 128 MiB, v7x: 64 MiB).
    capacity = _vmem_capacity_bytes()
    budget = int(0.85 * capacity)

    out_bufs = 1 if out_single_buffer else 2
    fixed = (2 * C * N * f32                         # x block (double-buffered)
             + out_bufs * C * N * f32                # out block
             + 2 * N * Cq * mxu_bytes                # -K^T block (double-buffered)
             + 2 * (Cq * C + C * C + Cq + C) * f32   # weights / biases
             + (Cq * N + C * N) * mxu_bytes          # q / softmax(v) scratch
             + C * N * f32)                          # f32 accumulator
    init_extra = 3 * C * N * f32                     # f32 q/v + softmax temporaries

    if tile_n is None:
        strip_budget = max(budget - fixed - init_extra, 80 * N)
        tile_n = _pick_tile_n(N, strip_budget)
    assert N % tile_n == 0, (N, tile_n)
    n_tiles = N // tile_n

    vmem_limit = fixed + init_extra + 10 * tile_n * N + (2 << 20)
    vmem_limit = int(min(max(vmem_limit, 16 * 2**20), budget))

    kernel = functools.partial(_pam_kernel, tile_n=tile_n, mxu_dtype=mxu_dtype,
                               attn_exp_dtype=attn_exp_dtype)

    out_spec_kwargs = {}
    if out_single_buffer:
        # v7x VMEM relief: the output block is only written at the last strip,
        # so a single buffer suffices.  Off by default (conservative).
        out_spec_kwargs = dict(pipeline_mode=pl.Buffered(1))
    out_spec = pl.BlockSpec((None, C, N), lambda b, t: (b, 0, 0),
                            **out_spec_kwargs)

    out_flat = pl.pallas_call(
        kernel,
        out_shape=jax.ShapeDtypeStruct((B, C, N), x.dtype),
        grid=(B, n_tiles),
        in_specs=[
            pl.BlockSpec((None, C, N), lambda b, t: (b, 0, 0)),     # x
            pl.BlockSpec((None, N, Cq), lambda b, t: (b, 0, 0)),    # -K^T (bf16)
            pl.BlockSpec((Cq, C), lambda b, t: (0, 0)),             # wq
            pl.BlockSpec((Cq, 1), lambda b, t: (0, 0)),             # bq
            pl.BlockSpec((C, C), lambda b, t: (0, 0)),              # wv
            pl.BlockSpec((C, 1), lambda b, t: (0, 0)),              # bv
            pl.BlockSpec(memory_space=pltpu.MemorySpace.SMEM),      # gamma scalar
        ],
        out_specs=out_spec,
        scratch_shapes=[
            pltpu.VMEM((Cq, N), mxu_dtype),     # q
            pltpu.VMEM((C, N), mxu_dtype),      # softmax(v)
            pltpu.VMEM((C, N), jnp.float32),    # output accumulator
        ],
        compiler_params=pltpu.CompilerParams(
            dimension_semantics=("parallel", "arbitrary"),
            vmem_limit_bytes=vmem_limit),
    )(x_flat, kt_neg, wq, bq, wv, bv, gamma)

    return out_flat.reshape(B, C, H, W)


def pam_reference(x, wq, bq, wk, bk, wv, bv, gamma):
    """Pure-JAX replica of the PyTorch forward (for verification)."""
    B, C, H, W = x.shape
    N = H * W
    xf = x.reshape(B, C, N)
    hp = jax.lax.Precision.HIGHEST
    q = jnp.einsum('oc,bcn->bon', wq, xf, precision=hp) + bq[None]
    k = jnp.einsum('oc,bcn->bon', wk, xf, precision=hp) + bk[None]
    v = jnp.einsum('oc,bcn->bon', wv, xf, precision=hp) + bv[None]
    energy = jnp.einsum('bcn,bcm->bnm', q, k, precision=hp)    # Q^T K
    energy = jnp.swapaxes(energy, 1, 2)                        # permute(0, 2, 1)
    att = jax.nn.softmax(jnp.max(energy, -1, keepdims=True) - energy, axis=-1)
    v_sm = jax.nn.softmax(v, axis=-1)
    out = jnp.einsum('bcn,bnm->bcm', v_sm, att, precision=hp)
    out = jax.nn.softmax(out, axis=-1)
    out = out.reshape(B, C, H, W)
    return x + jnp.asarray(gamma, jnp.float32).reshape(()) * out


if __name__ == "__main__":
    B, C, H, W = 2, 16, 16, 16
    Cq = C // 2

    key = jax.random.PRNGKey(0)
    ks = jax.random.split(key, 7)
    x = jax.random.normal(ks[0], (B, C, H, W), jnp.float32)
    # Deterministic synthetic parameters (shapes from PAM_Module.__init__).
    wq = jax.random.normal(ks[1], (Cq, C), jnp.float32) * 0.1   # query_conv weight
    bq = jax.random.normal(ks[2], (Cq, 1), jnp.float32) * 0.1   # query_conv bias
    wk = jax.random.normal(ks[3], (Cq, C), jnp.float32) * 0.1   # key_conv weight
    bk = jax.random.normal(ks[4], (Cq, 1), jnp.float32) * 0.1   # key_conv bias
    wv = jax.random.normal(ks[5], (C, C), jnp.float32) * 0.1    # value_conv weight
    bv = jax.random.normal(ks[6], (C, 1), jnp.float32) * 0.1    # value_conv bias
    # PAM_Module.__init__ sets gamma = 0 (output would equal x); use a nonzero
    # value so the attention path is actually exercised.
    gamma = jnp.full((1, 1), 0.5, jnp.float32)

    # tile_n=128 with N=256 exercises the multi-strip accumulation path.
    out = jax.block_until_ready(
        pam_module(x, wq, bq, wk, bk, wv, bv, gamma, tile_n=128))
    ref = pam_reference(x, wq, bq, wk, bk, wv, bv, gamma)

    assert out.shape == x.shape
    max_err = float(jnp.max(jnp.abs(out - ref)))
    # bf16 MXU operands + bf16/approx attention softmax: allow ~1e-3 deviation.
    assert max_err < 2e-3, max_err
    print("KERNEL_OK")
</pallas_src>

<mosaic_0001>
module attributes {stable_mosaic.version = 11 : i64} {
  func.func @_pam_kernel(%arg0: i32, %arg1: i32, %arg2: memref<1x16x256xf32, #tpu.memory_space<vmem>>, %arg3: memref<1x256x8xbf16, #tpu.memory_space<vmem>>, %arg4: memref<8x16xf32, #tpu.memory_space<vmem>>, %arg5: memref<8x1xf32, #tpu.memory_space<vmem>>, %arg6: memref<16x16xf32, #tpu.memory_space<vmem>>, %arg7: memref<16x1xf32, #tpu.memory_space<vmem>>, %arg8: memref<1x1xf32, #tpu.memory_space<smem>>, %arg9: memref<1x16x256xf32, #tpu.memory_space<vmem>>, %arg10: memref<8x256xbf16, #tpu.memory_space<vmem>>, %arg11: memref<16x256xbf16, #tpu.memory_space<vmem>>, %arg12: memref<16x256xf32, #tpu.memory_space<vmem>>) attributes {dimension_semantics = [#tpu.dimension_semantics<parallel>, #tpu.dimension_semantics<arbitrary>], iteration_bounds = array<i64: 2, 2>, scalar_prefetch = 0 : i64, scratch_operands = 3 : i64, tpu.core_type = #tpu.core_type<tc>, window_params = [{transform_indices = @transform_0, window_bounds = array<i64: 1, 16, 256>}, {transform_indices = @transform_1, window_bounds = array<i64: 1, 256, 8>}, {pipeline_mode = #tpu.pipeline_mode<synchronous>, transform_indices = @transform_2, window_bounds = array<i64: 8, 16>}, {pipeline_mode = #tpu.pipeline_mode<synchronous>, transform_indices = @transform_3, window_bounds = array<i64: 8, 1>}, {pipeline_mode = #tpu.pipeline_mode<synchronous>, transform_indices = @transform_4, window_bounds = array<i64: 16, 16>}, {pipeline_mode = #tpu.pipeline_mode<synchronous>, transform_indices = @transform_5, window_bounds = array<i64: 16, 1>}, {transform_indices = @transform_6, window_bounds = array<i64: 1, 1>}, {transform_indices = @transform_7, window_bounds = array<i64: 1, 16, 256>}]} {
    %c0_i32 = arith.constant 0 : i32
    %0 = arith.cmpi eq, %arg1, %c0_i32 : i32
    %1 = arith.extui %0 : i1 to i32
    %c0_i32_0 = arith.constant 0 : i32
    %2 = arith.cmpi ne, %1, %c0_i32_0 : i32
    scf.if %2 {
      %c0_13 = arith.constant 0 : index
      %c0_14 = arith.constant 0 : index
      %c0_15 = arith.constant 0 : index
      %30 = vector.load %arg2[%c0_13, %c0_14, %c0_15] : memref<1x16x256xf32, #tpu.memory_space<vmem>>, vector<1x16x256xf32>
      %31 = vector.shape_cast %30 : vector<1x16x256xf32> to vector<16x256xf32>
      %c0_16 = arith.constant 0 : index
      %c0_17 = arith.constant 0 : index
      %32 = vector.load %arg4[%c0_16, %c0_17] : memref<8x16xf32, #tpu.memory_space<vmem>>, vector<8x16xf32>
      %cst_18 = arith.constant dense<0.000000e+00> : vector<8x256xf32>
      %33 = tpu.matmul %32, %31, %cst_18 {dimension_numbers = #tpu.dot_dimension_numbers<[1], [0], [0], [1], [0, 0, 1, 1], [], []>} : vector<8x16xf32>, vector<16x256xf32>, vector<8x256xf32> -> vector<8x256xf32>
      %c0_19 = arith.constant 0 : index
      %c0_20 = arith.constant 0 : index
      %34 = vector.load %arg5[%c0_19, %c0_20] : memref<8x1xf32, #tpu.memory_space<vmem>>, vector<8x1xf32>
      %35 = vector.broadcast %34 : vector<8x1xf32> to vector<8x256xf32>
      %36 = arith.addf %33, %35 : vector<8x256xf32>
      %37 = arith.truncf %36 : vector<8x256xf32> to vector<8x256xbf16>
      %c0_21 = arith.constant 0 : index
      %c0_22 = arith.constant 0 : index
      %38 = vector.load %arg10[%c0_21, %c0_22] : memref<8x256xbf16, #tpu.memory_space<vmem>>, vector<8x256xbf16>
      tpu.vector_store %arg10[%c0_21, %c0_22], %37 {strides = array<i32>} : memref<8x256xbf16, #tpu.memory_space<vmem>>, vector<8x256xbf16>,
      %c0_23 = arith.constant 0 : index
      %c0_24 = arith.constant 0 : index
      %39 = vector.load %arg6[%c0_23, %c0_24] : memref<16x16xf32, #tpu.memory_space<vmem>>, vector<16x16xf32>
      %cst_25 = arith.constant dense<0.000000e+00> : vector<16x256xf32>
      %40 = tpu.matmul %39, %31, %cst_25 {dimension_numbers = #tpu.dot_dimension_numbers<[1], [0], [0], [1], [0, 0, 1, 1], [], []>} : vector<16x16xf32>, vector<16x256xf32>, vector<16x256xf32> -> vector<16x256xf32>
      %c0_26 = arith.constant 0 : index
      %c0_27 = arith.constant 0 : index
      %41 = vector.load %arg7[%c0_26, %c0_27] : memref<16x1xf32, #tpu.memory_space<vmem>>, vector<16x1xf32>
      %42 = vector.broadcast %41 : vector<16x1xf32> to vector<16x256xf32>
      %43 = arith.addf %40, %42 : vector<16x256xf32>
      %cst_28 = arith.constant dense<0xFF800000> : vector<16xf32>
      %44 = vector.multi_reduction <maximumf>, %43, %cst_28 [1] : vector<16x256xf32> to vector<16xf32>
      %45 = vector.shape_cast %44 : vector<16xf32> to vector<16x1xf32>
      %46 = vector.broadcast %45 : vector<16x1xf32> to vector<16x256xf32>
      %47 = arith.subf %43, %46 : vector<16x256xf32>
      %48 = math.exp %47 : vector<16x256xf32>
      %cst_29 = arith.constant dense<0.000000e+00> : vector<16xf32>
      %49 = vector.multi_reduction <add>, %48, %cst_29 [1] : vector<16x256xf32> to vector<16xf32>
      %50 = vector.shape_cast %49 : vector<16xf32> to vector<16x1xf32>
      %cst_30 = arith.constant 1.000000e+00 : f32
      %51 = vector.broadcast %cst_30 : f32 to vector<16x1xf32>
      %52 = arith.divf %51, %50 : vector<16x1xf32>
      %53 = vector.broadcast %52 : vector<16x1xf32> to vector<16x256xf32>
      %54 = arith.mulf %48, %53 : vector<16x256xf32>
      %55 = arith.truncf %54 : vector<16x256xf32> to vector<16x256xbf16>
      %c0_31 = arith.constant 0 : index
      %c0_32 = arith.constant 0 : index
      %56 = vector.load %arg11[%c0_31, %c0_32] : memref<16x256xbf16, #tpu.memory_space<vmem>>, vector<16x256xbf16>
      tpu.vector_store %arg11[%c0_31, %c0_32], %55 {strides = array<i32>} : memref<16x256xbf16, #tpu.memory_space<vmem>>, vector<16x256xbf16>,
      %cst_33 = arith.constant 0.000000e+00 : f32
      %57 = vector.broadcast %cst_33 : f32 to vector<16x256xf32>
      %c0_34 = arith.constant 0 : index
      %c0_35 = arith.constant 0 : index
      %58 = vector.load %arg12[%c0_34, %c0_35] : memref<16x256xf32, #tpu.memory_space<vmem>>, vector<16x256xf32>
      tpu.vector_store %arg12[%c0_34, %c0_35], %57 {strides = array<i32>} : memref<16x256xf32, #tpu.memory_space<vmem>>, vector<16x256xf32>,
    } else {
    }
    %c128_i32 = arith.constant 128 : i32
    %3 = arith.muli %arg1, %c128_i32 : i32
    %4 = tpu.assume_multiple %3, 128 : i32
    %c0 = arith.constant 0 : index
    %5 = arith.index_cast %4 : i32 to index
    %c0_1 = arith.constant 0 : index
    %6 = vector.load %arg3[%c0, %5, %c0_1] : memref<1x256x8xbf16, #tpu.memory_space<vmem>>, vector<1x128x8xbf16>
    %7 = vector.shape_cast %6 : vector<1x128x8xbf16> to vector<128x8xbf16>
    %c0_2 = arith.constant 0 : index
    %c0_3 = arith.constant 0 : index
    %8 = vector.load %arg10[%c0_2, %c0_3] : memref<8x256xbf16, #tpu.memory_space<vmem>>, vector<8x256xbf16>
    %cst = arith.constant dense<0.000000e+00> : vector<128x256xf32>
    %9 = tpu.matmul %7, %8, %cst {dimension_numbers = #tpu.dot_dimension_numbers<[1], [0], [0], [1], [0, 0, 1, 1], [], []>} : vector<128x8xbf16>, vector<8x256xbf16>, vector<128x256xf32> -> vector<128x256xf32>
    %cst_4 = arith.constant dense<0xFF800000> : vector<128xf32>
    %10 = vector.multi_reduction <maximumf>, %9, %cst_4 [1] : vector<128x256xf32> to vector<128xf32>
    %11 = vector.shape_cast %10 : vector<128xf32> to vector<128x1xf32>
    %12 = vector.broadcast %11 : vector<128x1xf32> to vector<128x256xf32>
    %13 = arith.subf %9, %12 : vector<128x256xf32>
    %14 = math.exp %13 : vector<128x256xf32>
    %cst_5 = arith.constant dense<0.000000e+00> : vector<128xf32>
    %15 = vector.multi_reduction <add>, %14, %cst_5 [1] : vector<128x256xf32> to vector<128xf32>
    %16 = vector.shape_cast %15 : vector<128xf32> to vector<128x1xf32>
    %17 = tpu.reciprocal %16 {approx = true} : vector<128x1xf32> -> vector<128x1xf32>
    %18 = vector.broadcast %17 : vector<128x1xf32> to vector<128x256xf32>
    %19 = arith.mulf %14, %18 : vector<128x256xf32>
    %20 = arith.truncf %19 : vector<128x256xf32> to vector<128x256xbf16>
    %c0_6 = arith.constant 0 : index
    %21 = arith.index_cast %4 : i32 to index
    %22 = vector.load %arg11[%c0_6, %21] : memref<16x256xbf16, #tpu.memory_space<vmem>>, vector<16x128xbf16>
    %c0_7 = arith.constant 0 : index
    %c0_8 = arith.constant 0 : index
    %23 = vector.load %arg12[%c0_7, %c0_8] : memref<16x256xf32, #tpu.memory_space<vmem>>, vector<16x256xf32>
    %cst_9 = arith.constant dense<0.000000e+00> : vector<16x256xf32>
    %24 = tpu.matmul %22, %20, %cst_9 {dimension_numbers = #tpu.dot_dimension_numbers<[1], [0], [0], [1], [0, 0, 1, 1], [], []>} : vector<16x128xbf16>, vector<128x256xbf16>, vector<16x256xf32> -> vector<16x256xf32>
    %25 = arith.addf %23, %24 : vector<16x256xf32>
    %c0_10 = arith.constant 0 : index
    %c0_11 = arith.constant 0 : index
    %26 = vector.load %arg12[%c0_10, %c0_11] : memref<16x256xf32, #tpu.memory_space<vmem>>, vector<16x256xf32>
    tpu.vector_store %arg12[%c0_10, %c0_11], %25 {strides = array<i32>} : memref<16x256xf32, #tpu.memory_space<vmem>>, vector<16x256xf32>,
    %c1_i32 = arith.constant 1 : i32
    %27 = arith.cmpi eq, %arg1, %c1_i32 : i32
    %28 = arith.extui %27 : i1 to i32
    %c0_i32_12 = arith.constant 0 : i32
    %29 = arith.cmpi ne, %28, %c0_i32_12 : i32
    scf.if %29 {
      %c0_13 = arith.constant 0 : index
      %c0_14 = arith.constant 0 : index
      %30 = vector.load %arg12[%c0_13, %c0_14] : memref<16x256xf32, #tpu.memory_space<vmem>>, vector<16x256xf32>
      %cst_15 = arith.constant dense<0xFF800000> : vector<16xf32>
      %31 = vector.multi_reduction <maximumf>, %30, %cst_15 [1] : vector<16x256xf32> to vector<16xf32>
      %32 = vector.shape_cast %31 : vector<16xf32> to vector<16x1xf32>
      %33 = vector.broadcast %32 : vector<16x1xf32> to vector<16x256xf32>
      %34 = arith.subf %30, %33 : vector<16x256xf32>
      %35 = math.exp %34 : vector<16x256xf32>
      %cst_16 = arith.constant dense<0.000000e+00> : vector<16xf32>
      %36 = vector.multi_reduction <add>, %35, %cst_16 [1] : vector<16x256xf32> to vector<16xf32>
      %37 = vector.shape_cast %36 : vector<16xf32> to vector<16x1xf32>
      %cst_17 = arith.constant 1.000000e+00 : f32
      %38 = vector.broadcast %cst_17 : f32 to vector<16x1xf32>
      %39 = arith.divf %38, %37 : vector<16x1xf32>
      %40 = vector.broadcast %39 : vector<16x1xf32> to vector<16x256xf32>
      %41 = arith.mulf %35, %40 : vector<16x256xf32>
      %c0_18 = arith.constant 0 : index
      %c0_19 = arith.constant 0 : index
      %c0_20 = arith.constant 0 : index
      %42 = vector.load %arg2[%c0_18, %c0_19, %c0_20] : memref<1x16x256xf32, #tpu.memory_space<vmem>>, vector<1x16x256xf32>
      %43 = vector.shape_cast %42 : vector<1x16x256xf32> to vector<16x256xf32>
      %c0_21 = arith.constant 0 : index
      %c0_22 = arith.constant 0 : index
      %44 = memref.load %arg8[%c0_21, %c0_22] : memref<1x1xf32, #tpu.memory_space<smem>>
      %45 = vector.broadcast %44 : f32 to vector<16x256xf32>
      %46 = arith.mulf %45, %41 : vector<16x256xf32>
      %47 = arith.addf %43, %46 : vector<16x256xf32>
      %c0_23 = arith.constant 0 : index
      %c0_24 = arith.constant 0 : index
      %c0_25 = arith.constant 0 : index
      %48 = vector.load %arg9[%c0_23, %c0_24, %c0_25] : memref<1x16x256xf32, #tpu.memory_space<vmem>>, vector<1x16x256xf32>
      %49 = vector.shape_cast %48 : vector<1x16x256xf32> to vector<16x256xf32>
      %50 = vector.shape_cast %47 : vector<16x256xf32> to vector<1x16x256xf32>
      tpu.vector_store %arg9[%c0_23, %c0_24, %c0_25], %50 {strides = array<i32>} : memref<1x16x256xf32, #tpu.memory_space<vmem>>, vector<1x16x256xf32>,
    } else {
    }
    return
  }
  func.func @transform_0(%arg0: i32, %arg1: i32) -> (i32, i32, i32) {
    %c0_i32 = arith.constant 0 : i32
    %c0_i32_0 = arith.constant 0 : i32
    %c0_i32_1 = arith.constant 0 : i32
    return %arg0, %c0_i32, %c0_i32_0 : i32, i32, i32
  }
  func.func @transform_1(%arg0: i32, %arg1: i32) -> (i32, i32, i32) {
    %c0_i32 = arith.constant 0 : i32
    %c0_i32_0 = arith.constant 0 : i32
    %c0_i32_1 = arith.constant 0 : i32
    return %arg0, %c0_i32, %c0_i32_0 : i32, i32, i32
  }
  func.func @transform_2(%arg0: i32, %arg1: i32) -> (i32, i32) {
    %c0_i32 = arith.constant 0 : i32
    %c0_i32_0 = arith.constant 0 : i32
    %c0_i32_1 = arith.constant 0 : i32
    return %c0_i32, %c0_i32_0 : i32, i32
  }
  func.func @transform_3(%arg0: i32, %arg1: i32) -> (i32, i32) {
    %c0_i32 = arith.constant 0 : i32
    %c0_i32_0 = arith.constant 0 : i32
    %c0_i32_1 = arith.constant 0 : i32
    return %c0_i32, %c0_i32_0 : i32, i32
  }
  func.func @transform_4(%arg0: i32, %arg1: i32) -> (i32, i32) {
    %c0_i32 = arith.constant 0 : i32
    %c0_i32_0 = arith.constant 0 : i32
    %c0_i32_1 = arith.constant 0 : i32
    return %c0_i32, %c0_i32_0 : i32, i32
  }
  func.func @transform_5(%arg0: i32, %arg1: i32) -> (i32, i32) {
    %c0_i32 = arith.constant 0 : i32
    %c0_i32_0 = arith.constant 0 : i32
    %c0_i32_1 = arith.constant 0 : i32
    return %c0_i32, %c0_i32_0 : i32, i32
  }
  func.func @transform_6(%arg0: i32, %arg1: i32) -> (i32, i32) {
    %c0_i32 = arith.constant 0 : i32
    %c0_i32_0 = arith.constant 0 : i32
    %c0_i32_1 = arith.constant 0 : i32
    return %c0_i32, %c0_i32_0 : i32, i32
  }
  func.func @transform_7(%arg0: i32, %arg1: i32) -> (i32, i32, i32) {
    %c0_i32 = arith.constant 0 : i32
    %c0_i32_0 = arith.constant 0 : i32
    %c0_i32_1 = arith.constant 0 : i32
    return %arg0, %c0_i32, %c0_i32_0 : i32, i32, i32
  }
}

</mosaic_0001>

<bundles_post_ra>
// kernel: tpu_custom_call.1
= control target key start
LH: loop header
LB: loop body
LE: loop exit
PB: predicated region body
PF: predicated region fallthrough
CT: control target
= control target key end

     0   :  { %s2076_s0 = inlined_call_operand.vmem [shape: f32[2,16,256], index: 0, kind: input, shape index: {}]   ;;  %s2077_s1 = inlined_call_operand.vmem [shape: bf16[2,256,8], index: 1, kind: input, shape index: {}]   ;;  %s2078_s2 = inlined_call_operand.vmem [shape: f32[8,16], index: 2, kind: input, shape index: {}]   ;;  %s2079_s3 = inlined_call_operand.vmem [shape: f32[8,1], index: 3, kind: input, shape index: {}]   ;;  %s2080_s4 = inlined_call_operand.vmem [shape: f32[16,16], index: 4, kind: input, shape index: {}]   ;;  %s2081_s5 = inlined_call_operand.vmem [shape: f32[16,1], index: 5, kind: input, shape index: {}]   ;;  %s2082_s6 = inlined_call_operand.<no memory space> [shape: f32[1,1], index: 6, kind: input, shape index: {}]   ;;  %s2083_s7 = inlined_call_operand.hbm [shape: f32[2,16,256], index: 7, kind: output, shape index: {}]  }
   0x1   :  { %2085 = sst [smem:[#allocation10_spill]] %s2076_s0 }
   0x2   :  { %12 = sst [smem:[#allocation5]] %s2082_s6 }
   0x3   :  { %13 = vsyncpa [#allocation7], 0 }
   0x4   :  { %15 = vsyncpa [#allocation7 + $0x1], 0  ;;  %s1629_s26 = smov 0   ;;  %s1631_s27 = smov 0  }
   0x5   :  { %s1633_s28 = smov 0   ;;  %s1635_s29 = smov 0  }
   0x6   :  { %s1637_s30 = smov 0   ;;  %s1639_s8 = smov 0  }
   0x7   :  { %s1641_s9 = smov 0   ;;  %s1643_s10 = smov 0  }
   0x8 LB: > { %s1198_s6 = sadd.s32 4294967295, %s1580_s10   ;;  %s1199_s11 = sadd.s32 4294967294, %s1580_s10   ;;  %s1580_s10 = sphi %s1643_s10, %s21_s10   ;;  %s1576_s9 = sphi %s1641_s9, %s2097_s9   ;;  %s1572_s8 = sphi %s1639_s8, %s2096_s8   ;;  %s1568_s30 = sphi %s1637_s30, %s2095_s30   ;;  %s1564_s29 = sphi %s1635_s29, %s2094_s29   ;;  %s1560_s28 = sphi %s1633_s28, %s2093_s28   ;;  %s1556_s27 = sphi %s1631_s27, %s2092_s27   ;;  %s1552_s26 = sphi %s1629_s26, %s2091_s26  }
   0x9   : > { %s30_s12 = sadd.s32 1, %s1572_s8  ;;  %s33_s13 = sadd.s32 1, %s1576_s9 }
   0xa   : > { %p31_p0 = scmp.ge.s32.totalorder %s30_s12, 2  ;;  %p207_p1 = scmp.ne.s32.totalorder %s1560_s28, %s1556_s27 }
   0xb   : > { %p208_p2 = scmp.eq.s32.totalorder %s1198_s6, 3  ;;  %p213_p4 = scmp.ne.s32.totalorder %s1556_s27, %s1552_s26 }
   0xc   : > { %s2099_s12 = smov (%p31_p0, %s30_s12), 0  ;;  %s2101_s13 = smov (!%p31_p0, %s33_s13), %s1576_s9 }
   0xd   : > { %p1678_p3 = por %p208_p2, %p207_p1  ;;  %p35_p5 = scmp.ge.s32.totalorder %s2101_s13, 2 }
   0xe   : > { %p214_p6 = scmp.eq.s32.totalorder %s1199_s11, 3  ;;  %p1202_p7 = scmp.ge.s32.totalorder %s1580_s10, 1 }
   0xf   : > { %p263_p8 = scmp.lt.s32.totalorder %s1580_s10, 5  ;;  %s2103_s13 = smov (%p35_p5, %s2101_s13), 0 }
  0x10   : > { %2087 = sst [smem:[#allocation9_spill]] %s2103_s13  ;;  %p1688_p9 = por %p214_p6, %p213_p4 }
  0x11   : > { %p264_p10 = pnand %p1202_p7, %p263_p8  ;;  %s194_s16 = ssub.s32 %s1576_s9, %s2103_s13 }
  0x12   : > { %s197_s17 = sadd.s32 1, %s1560_s28  ;;  %p195_p11 = scmp.eq.s32.totalorder %s194_s16, 0 }
  0x13   : > { %267 = sbr.rel (%p264_p10) target bundleno = 1381 (0x565), region = 48  ;;  %s297_s19 = sand.u32 (!%p264_p10), 1, %s1556_s27  }
  0x14   : > { %s1696_s18 = scalar_select %p195_p11, %s1560_s28, %s197_s17  }
  0x15   : > { %p300_p12 = scmp.lt.s32.totalorder (!%p264_p10), %s1568_s30, 1  ;;  %s1203_s20 = sshll.u32 (!%p264_p10), %s297_s19, 5 }
  0x16   : > { %s2089_s0 = sld [smem:[#allocation10_spill]] (!%p264_p10)  ;;  %s1713_s13 = scalar_lea.vmem (!%p264_p10), [#allocation6], %s1203_s20 }
  0x17   : > { %p1208_p13 = scmp.ne.s32.totalorder (!%p264_p10), %s1564_s29, 0 }
  0x18   : > { %s301_s21 = scalar_select %p300_p12, %s1568_s30, 1 }
  0x19   : > { %314 = sbr.rel (%p1208_p13) target bundleno = 447 (0x1bf), region = 52 }
  0x1a   : > { %s1276_s22 = sshll.u32 %s301_s21, 5  ;;  %s1277_s23 = sshll.u32 %s301_s21, 7 }
  0x1b   : > { %s1711_s17 = scalar_lea.vmem %s2077_s1, %s1277_s23 }
  0x1c   : > { %s1706_s6 = scalar_lea.vmem %s2089_s0, %s1276_s22 }
  0x1e   : > { %v317_v0 = vld [vmem:[%s1706_s6 + $0x10] sm:$0xff]  ;;  %v318_v1 = vld [vmem:[%s1706_s6 + $0x18] sm:$0xff]  ;;  %v315_v2 = vld [vmem:[%s1706_s6] sm:$0xff]  ;;  %vm326_vm0 = vcmask 130048   ;;  %v1582_v5 = vmov 0   ;;  %v1583_v45 = vmov 0.0  }
  0x1f   : > { %406 = vmatpush.msra.mxu2 %v317_v0  ;;  %429 = vmatpush.msra.mxu3 %v318_v1  ;;  %v316_v3 = vld [vmem:[%s1706_s6 + $0x8] sm:$0xff]  ;;  %v372_v4 = vld [vmem:[%s2080_s4] sm:$0xff]  ;;  %500 = vst [vmem:[#allocation4 + $0x10] sm:$0xff] %v1583_v45 }
  0x20   : > { %1365 = vset.pattern.permute.xlu0 %v1582_v5  ;;  %v374_v6 = vld [vmem:[%s2081_s5] sm:$0xff]  ;;  %344 = vmatpush.msra.mxu0 %v317_v0  ;;  %v373_v8 = vld [vmem:[%s2080_s4 + $0x8] sm:$0xff]  ;;  %501 = vst [vmem:[#allocation4] sm:$0xff] %v1583_v45 }
  0x21   : > { %407 = vmatpush.msra.mxu2 %v315_v2  ;;  %430 = vmatpush.msra.mxu3 %v316_v3  ;;  %v319_v7 = vld [vmem:[%s2078_s2] sm:$0xff]  ;;  %v375_v9 = vld [vmem:[%s2081_s5 + $0x8] sm:$0xff]  ;;  %502 = vst [vmem:[#allocation4 + $0x18] sm:$0xff] %v1583_v45 }
  0x22   : > { %1211 = vmatmul.msk.f32.vlgmr.msra.gmra.mxu2 %vm326_vm0, %v372_v4  ;;  %1213 = vmatmul.msk.f32.vlgmr.msra.gmra.mxu3 %vm326_vm0, %v372_v4  ;;  %v320_v10 = vld [vmem:[%s2079_s3] sm:$0xff]  ;;  %503 = vst [vmem:[#allocation4 + $0x8] sm:$0xff] %v1583_v45 }
  0x23   : > { %378 = vperm.xlu0 %1365, %v374_v6   ;;  %364 = vmatpush.msra.mxu1 %v318_v1 }
  0x24   : > { %345 = vmatpush.msra.mxu0 %v315_v2 }
  0x25   : > { %365 = vmatpush.msra.mxu1 %v316_v3  ;;  %1209 = vmatmul.msk.f32.vlgmr.msra.gmra.mxu0 %vm326_vm0, %v319_v7 }
  0x26   : > { %1210 = vmatmul.msk.f32.vlgmr.msra.gmra.mxu1 %vm326_vm0, %v319_v7 }
  0x2a   : > { %1212 = vmatmul.msk.f32.gmra.mxu2 %vm326_vm0, %v373_v8  ;;  %1214 = vmatmul.msk.f32.gmra.mxu3 %vm326_vm0, %v373_v8 }
  0x2b   : > { %383 = vperm.xlu0 %1365, %v375_v9  }
  0x33   : > { %323 = vperm.xlu0 %1365, %v320_v10  }
  0x95   : > { %v379_v11 = vpop.permute.xlu0 %378 }
  0x9d   : > { %v384_v12 = vpop.permute.xlu0 %383 }
  0xa2   : > { %v347_v13 = vpop.f32.mrf.mxu0 }
  0xa3   : > { %v367_v14 = vpop.f32.mrf.mxu1 }
  0xa5   : > { %v324_v15 = vpop.permute.xlu0 %323  ;;  %v409_v16 = vpop.f32.mrf.mxu2 }
  0xa6   : > { %v348_v17 = vadd.f32 %v347_v13, %v324_v15  ;;  %v368_v18 = vadd.f32 %v367_v14, %v324_v15  ;;  %v410_v19 = vadd.f32 %v409_v16, %v379_v11  ;;  %v432_v20 = vpop.f32.mrf.mxu3 }
  0xa7   : > { %v433_v21 = vadd.f32 %v432_v20, %v379_v11 }
  0xa8   : > { %v370_v22 = vpack.c.bf16 %v368_v18, %v348_v17 }
  0xa9   : > { %v438_v23 = vmax.f32 %v410_v19, %v433_v21 }
  0xaa   : > { %371 = vst [vmem:[#allocation2] sm:$0xff] %v370_v22 }
  0xab   : > { %439 = vmax.xlane.f32.xlu1 %v438_v23 }
  0xad   : > { %v412_v24 = vpop.f32.mrf.mxu2 }
  0xae   : > { %v413_v25 = vadd.f32 %v412_v24, %v384_v12  ;;  %v435_v26 = vpop.f32.mrf.mxu3 }
  0xaf   : > { %v436_v27 = vadd.f32 %v435_v26, %v384_v12 }
  0xb1   : > { %v441_v28 = vmax.f32 %v413_v25, %v436_v27 }
  0xb3   : > { %442 = vmax.xlane.f32.xlu1 %v441_v28 }
 0x11e   : > { %v440_v29 = vpop.xlane.xlu1 %439 }
 0x11f   : > { %v444_v30 = vsub.f32 %v410_v19, %v440_v29  ;;  %v445_v31 = vsub.f32 %v433_v21, %v440_v29 }
 0x121   : > { %v448_v32 = vmul.f32 1.442695, %v444_v30  ;;  %v450_v33 = vmul.f32 1.442695, %v445_v31 }
 0x123   : > { %1366 = vpow2.f32 %v448_v32 }
 0x124   : > { %1368 = vpow2.f32 %v450_v33 }
 0x126   : > { %v443_v34 = vpop.xlane.xlu1 %442 }
 0x127   : > { %v446_v35 = vsub.f32 %v413_v25, %v443_v34  ;;  %v447_v36 = vsub.f32 %v436_v27, %v443_v34 }
 0x129   : > { %v1367_v37 = vpop.eup %1366  ;;  %v452_v38 = vmul.f32 1.442695, %v446_v35  ;;  %v454_v39 = vmul.f32 1.442695, %v447_v36 }
 0x12a   : > { %v1369_v40 = vpop.eup %1368 }
 0x12b   : > { %1370 = vpow2.f32 %v452_v38  ;;  %v456_v41 = vadd.f32 %v1369_v40, %v1367_v37 }
 0x12c   : > { %1372 = vpow2.f32 %v454_v39 }
 0x12d   : > { %457 = vadd.xlane.f32.xlu2 %v456_v41 }
 0x131   : > { %v1371_v42 = vpop.eup %1370 }
 0x132   : > { %v1373_v43 = vpop.eup %1372 }
 0x133   : > { %v459_v44 = vadd.f32 %v1373_v43, %v1371_v42 }
 0x135   : > { %460 = vadd.xlane.f32.xlu2 %v459_v44 }
 0x1a0   : > { %v458_v46 = vpop.xlane.xlu2 %457 }
 0x1a1   : > { %1374 = vrcp.f32 %v458_v46  ;;  %v473_v51 = vand.u32 2147483648, %v458_v46  ;;  %v471_v53 = vand.u32 2147483647, %v458_v46  ;;  %vm467_vm2 = vweird.f32 %v458_v46 }
 0x1a3   : > { %v474_v56 = vor.u32 1.1754944e-38, %v473_v51  ;;  %vm472_vm4 = vcmp.eq.f32.partialorder %v471_v53, 8.507059e+37 }
 0x1a7   : > { %v1375_v47 = vpop.eup %1374 }
 0x1a8   : > { %v463_v48 = vmul.f32 %v1375_v47, %v458_v46  ;;  %v461_v49 = vpop.xlane.xlu2 %460  ;;  %vm468_vm1 = vweird.f32 %v1375_v47 }
 0x1a9   : > { %1376 = vrcp.f32 %v461_v49  ;;  %vm469_vm3 = vmor %vm467_vm2, %vm468_vm1  ;;  %v488_v63 = vand.u32 2147483648, %v461_v49  ;;  %v486_v2 = vand.u32 2147483647, %v461_v49  ;;  %vm482_vm6 = vweird.f32 %v461_v49 }
 0x1aa   : > { %v464_v50 = vsub.f32 1.0, %v463_v48 }
 0x1ab   : > { %v489_v4 = vor.u32 1.1754944e-38, %v488_v63  ;;  %vm487_vm8 = vcmp.eq.f32.partialorder %v486_v2, 8.507059e+37 }
 0x1ac   : > { %v465_v52 = vmul.f32 %v1375_v47, %v464_v50 }
 0x1ae   : > { %v466_v54 = vadd.f32 %v1375_v47, %v465_v52 }
 0x1af   : > { %v1377_v55 = vpop.eup %1376 }
 0x1b0   : > { %v470_v57 = vsel %vm469_vm3, %v1375_v47, %v466_v54  ;;  %v478_v58 = vmul.f32 %v1377_v55, %v461_v49  ;;  %vm483_vm5 = vweird.f32 %v1377_v55 }
 0x1b1   : > { %v475_v59 = vsel %vm472_vm4, %v474_v56, %v470_v57  ;;  %vm484_vm7 = vmor %vm482_vm6, %vm483_vm5 }
 0x1b2   : > { %v492_v60 = vmul.f32 %v1367_v37, %v475_v59  ;;  %v493_v61 = vmul.f32 %v1369_v40, %v475_v59  ;;  %v479_v62 = vsub.f32 1.0, %v478_v58 }
 0x1b4   : > { %v496_v0 = vpack.c.bf16 %v493_v61, %v492_v60  ;;  %v480_v1 = vmul.f32 %v1377_v55, %v479_v62 }
 0x1b6   : > { %498 = vst [vmem:[#allocation3] sm:$0xff] %v496_v0  ;;  %v481_v3 = vadd.f32 %v1377_v55, %v480_v1 }
 0x1b8   : > { %v485_v5 = vsel %vm484_vm7, %v1377_v55, %v481_v3 }
 0x1b9   : > { %v490_v6 = vsel %vm487_vm8, %v489_v4, %v485_v5 }
 0x1ba   : > { %v494_v7 = vmul.f32 %v1371_v42, %v490_v6  ;;  %v495_v8 = vmul.f32 %v1373_v43, %v490_v6 }
 0x1bc   : > { %v497_v9 = vpack.c.bf16 %v495_v8, %v494_v7 }
 0x1be   : > { %499 = vst [vmem:[#allocation3 + $0x8] sm:$0xff] %v497_v9 }
 0x1bf PF: > { %v525_v10 = vld [vmem:[#allocation2] sm:$0xff]  ;;  %s1215_s24 = sshll.u32 %s1564_s29, 7  ;;  %vm596_vm9 = vcmask 1043456   ;;  %vm571_vm10 = vcmask 64512   ;;  %p1270_p0 = scmp.ne.s32.totalorder %s1564_s29, 1 }
 0x1c0   : > { %v567_v11 = vunpack.c.l.b16 %v525_v10  ;;  %v568_v12 = vunpack.c.h.b16 %v525_v10  ;;  %s505_s25 = sshra.s32 %s1215_s24, 3  ;;  %s1079_s29 = sld [smem:[#allocation5]] (!%p1270_p0) }
 0x1c1   : > { %s1216_s11 = sshll.u32 %s505_s25, 2 }
 0x1c2   : > { %v569_v13 = vpack.c.b16 %v567_v11, %v567_v11  ;;  %v570_v14 = vpack.c.b16 %v568_v12, %v568_v12  ;;  %s508_s16 = scalar_lea.vmem %s1711_s17, %s1216_s11  ;;  %s957_s17 = sshra.s32 %s1215_s24, 7 }
 0x1c3   : > { %v1278_v17 = vld [vmem:[%s508_s16] sm:$0xff]  ;;  %v1283_v18 = vld [vmem:[%s508_s16 + $0x28] sm:$0xff]  ;;  %v1284_v20 = vld [vmem:[%s508_s16 + $0x30] sm:$0xff]  ;;  %s1265_s21 = sshll.u32 %s957_s17, 2 }
 0x1c4   : > { %v598_v15 = vsel %vm596_vm9, %v569_v13, 0  ;;  %v601_v16 = vsel %vm596_vm9, %v570_v14, 0  ;;  %v1279_v19 = vld [vmem:[%s508_s16 + $0x8] sm:$0xff]  ;;  %v1280_v21 = vld [vmem:[%s508_s16 + $0x10] sm:$0xff]  ;;  %v1285_v22 = vld [vmem:[%s508_s16 + $0x38] sm:$0xff]  ;;  %s960_s22 = scalar_lea.vmem [#allocation3], %s1265_s21 }
 0x1c5   : > { %610 = vmatpush.bf16.msra.mxu0 %v598_v15  ;;  %1288 = vmatpush.bf16.msra.mxu2 %v598_v15  ;;  %v1281_v23 = vld [vmem:[%s508_s16 + $0x18] sm:$0xff]  ;;  %v1282_v24 = vld [vmem:[%s508_s16 + $0x20] sm:$0xff] }
 0x1c6   : > { %659 = vmatpush.bf16.msra.mxu1 %v601_v16  ;;  %1289 = vmatpush.bf16.msra.mxu3 %v601_v16 }
 0x1c8   : > { %1249 = vmatmul.msk.bf16.vlgmr.msra.gmra.mxu0 %vm571_vm10, %v1278_v17  ;;  %1254 = vmatmul.msk.bf16.vlgmr.msra.gmra.mxu2 %vm571_vm10, %v1283_v18 }
 0x1c9   : > { %1257 = vmatmul.msk.bf16.vlgmr.msra.gmra.mxu1 %vm571_vm10, %v1278_v17  ;;  %1262 = vmatmul.msk.bf16.vlgmr.msra.gmra.mxu3 %vm571_vm10, %v1283_v18 }
 0x1d8   : > { %1250 = vmatmul.msk.bf16.gmra.mxu0 %vm571_vm10, %v1279_v19  ;;  %1255 = vmatmul.msk.bf16.gmra.mxu2 %vm571_vm10, %v1284_v20 }
 0x1d9   : > { %1258 = vmatmul.msk.bf16.gmra.mxu1 %vm571_vm10, %v1279_v19  ;;  %1263 = vmatmul.msk.bf16.gmra.mxu3 %vm571_vm10, %v1284_v20 }
 0x1e8   : > { %1251 = vmatmul.msk.bf16.gmra.mxu0 %vm571_vm10, %v1280_v21  ;;  %1256 = vmatmul.msk.bf16.gmra.mxu2 %vm571_vm10, %v1285_v22 }
 0x1e9   : > { %1259 = vmatmul.msk.bf16.gmra.mxu1 %vm571_vm10, %v1280_v21  ;;  %1264 = vmatmul.msk.bf16.gmra.mxu3 %vm571_vm10, %v1285_v22 }
 0x1f8   : > { %1252 = vmatmul.msk.bf16.gmra.mxu0 %vm571_vm10, %v1281_v23 }
 0x1f9   : > { %1260 = vmatmul.msk.bf16.gmra.mxu1 %vm571_vm10, %v1281_v23 }
 0x208   : > { %1253 = vmatmul.msk.bf16.gmra.mxu0 %vm571_vm10, %v1282_v24 }
 0x209   : > { %1261 = vmatmul.msk.bf16.gmra.mxu1 %vm571_vm10, %v1282_v24 }
 0x245   : > { %v1764_v25 = vpop.f32.mrf.mxu0 }
 0x246   : > { %v1766_v26 = vpop.f32.mrf.mxu1 }
 0x247   : > { %v701_v0 = vmax.f32 %v1764_v25, %v1766_v26 }
 0x24b   : > { %v1768_v27 = vpop.f32.mrf.mxu2 }
 0x24c   : > { %v1770_v28 = vpop.f32.mrf.mxu3 }
 0x24d   : > { %v1772_v29 = vpop.f32.mrf.mxu0  ;;  %v731_v30 = vmax.f32 %v1768_v27, %v1770_v28 }
 0x24e   : > { %v1776_v31 = vpop.f32.mrf.mxu1 }
 0x24f   : > { %732 = vmax.xlane.f32.xlu2 %v731_v30  ;;  %v704_v6 = vmax.f32 %v1772_v29, %v1776_v31 }
 0x253   : > { %v1778_v32 = vpop.f32.mrf.mxu2 }
 0x254   : > { %v1780_v33 = vpop.f32.mrf.mxu3 }
 0x255   : > { %v1782_v34 = vpop.f32.mrf.mxu0  ;;  %v734_v35 = vmax.f32 %v1778_v32, %v1780_v33 }
 0x256   : > { %v1786_v36 = vpop.f32.mrf.mxu1 }
 0x257   : > { %735 = vmax.xlane.f32.xlu2 %v734_v35  ;;  %v707_v5 = vmax.f32 %v1782_v34, %v1786_v36 }
 0x25b   : > { %v1788_v37 = vpop.f32.mrf.mxu2 }
 0x25c   : > { %v1790_v38 = vpop.f32.mrf.mxu3 }
 0x25d   : > { %v1792_v39 = vpop.f32.mrf.mxu0  ;;  %v737_v40 = vmax.f32 %v1788_v37, %v1790_v38 }
 0x25e   : > { %v1796_v41 = vpop.f32.mrf.mxu1 }
 0x25f   : > { %738 = vmax.xlane.f32.xlu1 %v737_v40  ;;  %v710_v8 = vmax.f32 %v1792_v39, %v1796_v41 }
 0x263   : > { %v1798_v42 = vpop.f32.mrf.mxu2 }
 0x264   : > { %v1800_v43 = vpop.f32.mrf.mxu3 }
 0x265   : > { %v1802_v44 = vpop.f32.mrf.mxu0  ;;  %v740_v45 = vmax.f32 %v1798_v42, %v1800_v43 }
 0x266   : > { %v1806_v46 = vpop.f32.mrf.mxu1 }
 0x267   : > { %741 = vmax.xlane.f32.xlu1 %v740_v45  ;;  %v713_v7 = vmax.f32 %v1802_v44, %v1806_v46 }
 0x26b   : > { %v1808_v47 = vpop.f32.mrf.mxu2 }
 0x26c   : > { %v1810_v48 = vpop.f32.mrf.mxu3 }
 0x26d   : > { %v1812_v49 = vpop.f32.mrf.mxu0  ;;  %v743_v50 = vmax.f32 %v1808_v47, %v1810_v48 }
 0x26e   : > { %v1816_v51 = vpop.f32.mrf.mxu1 }
 0x26f   : > { %744 = vmax.xlane.f32.xlu0 %v743_v50  ;;  %v716_v60 = vmax.f32 %v1812_v49, %v1816_v51 }
 0x273   : > { %v1818_v52 = vpop.f32.mrf.mxu2 }
 0x274   : > { %v1820_v53 = vpop.f32.mrf.mxu3 }
 0x275   : > { %v1822_v54 = vpop.f32.mrf.mxu0  ;;  %v746_v55 = vmax.f32 %v1818_v52, %v1820_v53 }
 0x276   : > { %v1826_v56 = vpop.f32.mrf.mxu1 }
 0x277   : > { %747 = vmax.xlane.f32.xlu0 %v746_v55  ;;  %v719_v57 = vmax.f32 %v1822_v54, %v1826_v56 }
 0x279   : > { %720 = vmax.xlane.f32.xlu2 %v719_v57 }
 0x27d   : > { %v1830_v58 = vpop.f32.mrf.mxu0 }
 0x27e   : > { %v1832_v59 = vpop.f32.mrf.mxu1 }
 0x27f   : > { %v722_v61 = vmax.f32 %v1830_v58, %v1832_v59 }
 0x281   : > { %717 = vmax.xlane.f32.xlu2 %v716_v60  ;;  %723 = vmax.xlane.f32.xlu0 %v722_v61 }
 0x285   : > { %v1838_v62 = vpop.f32.mrf.mxu0 }
 0x286   : > { %v1840_v63 = vpop.f32.mrf.mxu1 }
 0x287   : > { %v725_v1 = vmax.f32 %v1838_v62, %v1840_v63 }
 0x289   : > { %702 = vmax.xlane.f32.xlu2 %v701_v0  ;;  %726 = vmax.xlane.f32.xlu0 %v725_v1 }
 0x28d   : > { %v1846_v2 = vpop.f32.mrf.mxu0 }
 0x28e   : > { %v1848_v3 = vpop.f32.mrf.mxu1 }
 0x28f   : > { %v728_v4 = vmax.f32 %v1846_v2, %v1848_v3 }
 0x291   : > { %708 = vmax.xlane.f32.xlu0 %v707_v5  ;;  %729 = vmax.xlane.f32.xlu1 %v728_v4 }
 0x299   : > { %705 = vmax.xlane.f32.xlu0 %v704_v6  ;;  %714 = vmax.xlane.f32.xlu1 %v713_v7 }
 0x2a1   : > { %711 = vmax.xlane.f32.xlu1 %v710_v8 }
 0x2c2   : > { %v733_v9 = vpop.xlane.xlu2 %732 }
 0x2c3   : > { %v769_v10 = vsub.f32 %v1768_v27, %v733_v9  ;;  %v770_v11 = vsub.f32 %v1770_v28, %v733_v9 }
 0x2c5   : > { %v821_v12 = vmul.f32 1.442695, %v769_v10  ;;  %v823_v13 = vmul.f32 1.442695, %v770_v11 }
 0x2c7   : > { %1378 = vpow2.f32 %v821_v12 }
 0x2c8   : > { %1380 = vpow2.f32 %v823_v13 }
 0x2ca   : > { %v736_v14 = vpop.xlane.xlu2 %735 }
 0x2cb   : > { %v771_v15 = vsub.f32 %v1778_v32, %v736_v14  ;;  %v772_v16 = vsub.f32 %v1780_v33, %v736_v14 }
 0x2cd   : > { %v1864_v17 = vpop.eup %1378  ;;  %v825_v18 = vmul.f32 1.442695, %v771_v15  ;;  %v827_v19 = vmul.f32 1.442695, %v772_v16 }
 0x2ce   : > { %v1866_v20 = vpop.eup %1380 }
 0x2cf   : > { %1382 = vpow2.f32 %v825_v18  ;;  %v875_v21 = vadd.f32 %v1866_v20, %v1864_v17 }
 0x2d0   : > { %1384 = vpow2.f32 %v827_v19 }
 0x2d1   : > { %876 = vadd.xlane.f32.xlu2 %v875_v21 }
 0x2d2   : > { %v739_v22 = vpop.xlane.xlu1 %738 }
 0x2d3   : > { %v773_v23 = vsub.f32 %v1788_v37, %v739_v22  ;;  %v774_v24 = vsub.f32 %v1790_v38, %v739_v22 }
 0x2d5   : > { %v1872_v27 = vpop.eup %1382  ;;  %v829_v28 = vmul.f32 1.442695, %v773_v23  ;;  %v831_v30 = vmul.f32 1.442695, %v774_v24 }
 0x2d6   : > { %v1874_v32 = vpop.eup %1384 }
 0x2d7   : > { %1386 = vpow2.f32 %v829_v28  ;;  %v878_v33 = vadd.f32 %v1874_v32, %v1872_v27 }
 0x2d8   : > { %1388 = vpow2.f32 %v831_v30 }
 0x2d9   : > { %879 = vadd.xlane.f32.xlu0 %v878_v33 }
 0x2da   : > { %v742_v35 = vpop.xlane.xlu1 %741 }
 0x2db   : > { %v775_v40 = vsub.f32 %v1798_v42, %v742_v35  ;;  %v776_v45 = vsub.f32 %v1800_v43, %v742_v35 }
 0x2dd   : > { %v1880_v37 = vpop.eup %1386  ;;  %v833_v38 = vmul.f32 1.442695, %v775_v40  ;;  %v835_v50 = vmul.f32 1.442695, %v776_v45 }
 0x2de   : > { %v1882_v55 = vpop.eup %1388 }
 0x2df   : > { %1390 = vpow2.f32 %v833_v38  ;;  %v881_v57 = vadd.f32 %v1882_v55, %v1880_v37 }
 0x2e0   : > { %1392 = vpow2.f32 %v835_v50 }
 0x2e1   : > { %882 = vadd.xlane.f32.xlu0 %v881_v57 }
 0x2e2   : > { %v745_v60 = vpop.xlane.xlu0 %744 }
 0x2e3   : > { %v777_v61 = vsub.f32 %v1808_v47, %v745_v60  ;;  %v778_v0 = vsub.f32 %v1810_v48, %v745_v60 }
 0x2e5   : > { %v1888_v42 = vpop.eup %1390  ;;  %v837_v43 = vmul.f32 1.442695, %v777_v61  ;;  %v839_v1 = vmul.f32 1.442695, %v778_v0 }
 0x2e6   : > { %v1890_v4 = vpop.eup %1392 }
 0x2e7   : > { %1394 = vpow2.f32 %v837_v43  ;;  %v884_v5 = vadd.f32 %v1890_v4, %v1888_v42 }
 0x2e8   : > { %1396 = vpow2.f32 %v839_v1 }
 0x2e9   : > { %885 = vadd.xlane.f32.xlu1 %v884_v5 }
 0x2ea   : > { %v748_v6 = vpop.xlane.xlu0 %747 }
 0x2eb   : > { %v779_v7 = vsub.f32 %v1818_v52, %v748_v6  ;;  %v780_v8 = vsub.f32 %v1820_v53, %v748_v6 }
 0x2ec   : > { %v721_v47 = vpop.xlane.xlu2 %720 }
 0x2ed   : > { %v1896_v9 = vpop.eup %1394  ;;  %v841_v48 = vmul.f32 1.442695, %v779_v7  ;;  %v843_v10 = vmul.f32 1.442695, %v780_v8  ;;  %v761_v11 = vsub.f32 %v1822_v54, %v721_v47  ;;  %v762_v12 = vsub.f32 %v1826_v56, %v721_v47 }
 0x2ee   : > { %v1900_v13 = vpop.eup %1396 }
 0x2ef   : > { %1398 = vpow2.f32 %v841_v48  ;;  %v805_v14 = vmul.f32 1.442695, %v761_v11  ;;  %v807_v15 = vmul.f32 1.442695, %v762_v12  ;;  %v887_v16 = vadd.f32 %v1900_v13, %v1896_v9 }
 0x2f0   : > { %1400 = vpow2.f32 %v843_v10 }
 0x2f1   : > { %1402 = vpow2.f32 %v805_v14  ;;  %888 = vadd.xlane.f32.xlu1 %v887_v16 }
 0x2f2   : > { %1404 = vpow2.f32 %v807_v15 }
 0x2f4   : > { %v718_v52 = vpop.xlane.xlu2 %717  ;;  %v724_v53 = vpop.xlane.xlu0 %723 }
 0x2f5   : > { %v1904_v18 = vpop.eup %1398  ;;  %v759_v54 = vsub.f32 %v1812_v49, %v718_v52  ;;  %v760_v56 = vsub.f32 %v1816_v51, %v718_v52  ;;  %v763_v19 = vsub.f32 %v1830_v58, %v724_v53  ;;  %v764_v21 = vsub.f32 %v1832_v59, %v724_v53 }
 0x2f6   : > { %v1910_v22 = vpop.eup %1400 }
 0x2f7   : > { %v1912_v23 = vpop.eup %1402  ;;  %v801_v24 = vmul.f32 1.442695, %v759_v54  ;;  %v803_v28 = vmul.f32 1.442695, %v760_v56  ;;  %v809_v30 = vmul.f32 1.442695, %v763_v19  ;;  %v890_v33 = vadd.f32 %v1910_v22, %v1904_v18 }
 0x2f8   : > { %v1916_v35 = vpop.eup %1404  ;;  %v811_v40 = vmul.f32 1.442695, %v764_v21 }
 0x2f9   : > { %1406 = vpow2.f32 %v801_v24  ;;  %891 = vadd.xlane.f32.xlu2 %v890_v33  ;;  %v863_v49 = vadd.f32 %v1916_v35, %v1912_v23 }
 0x2fa   : > { %1408 = vpow2.f32 %v803_v28 }
 0x2fb   : > { %1410 = vpow2.f32 %v809_v30  ;;  %864 = vadd.xlane.f32.xlu0 %v863_v49 }
 0x2fc   : > { %1412 = vpow2.f32 %v811_v40  ;;  %v703_v51 = vpop.xlane.xlu2 %702  ;;  %v727_v58 = vpop.xlane.xlu0 %726 }
 0x2fd   : > { %v749_v59 = vsub.f32 %v1764_v25, %v703_v51  ;;  %v750_v45 = vsub.f32 %v1766_v26, %v703_v51  ;;  %v765_v38 = vsub.f32 %v1838_v62, %v727_v58  ;;  %v766_v50 = vsub.f32 %v1840_v63, %v727_v58 }
 0x2ff   : > { %v1924_v57 = vpop.eup %1406  ;;  %v781_v60 = vmul.f32 1.442695, %v749_v59  ;;  %v783_v61 = vmul.f32 1.442695, %v750_v45  ;;  %v813_v0 = vmul.f32 1.442695, %v765_v38 }
 0x300   : > { %v1926_v43 = vpop.eup %1408  ;;  %v815_v1 = vmul.f32 1.442695, %v766_v50 }
 0x301   : > { %v1928_v5 = vpop.eup %1410  ;;  %1414 = vpow2.f32 %v781_v60  ;;  %v860_v25 = vadd.f32 %v1926_v43, %v1924_v57 }
 0x302   : > { %v1932_v6 = vpop.eup %1412  ;;  %1416 = vpow2.f32 %v783_v61 }
 0x303   : > { %1418 = vpow2.f32 %v813_v0  ;;  %861 = vadd.xlane.f32.xlu0 %v860_v25  ;;  %v866_v26 = vadd.f32 %v1932_v6, %v1928_v5 }
 0x304   : > { %1420 = vpow2.f32 %v815_v1  ;;  %v709_v62 = vpop.xlane.xlu0 %708  ;;  %v730_v63 = vpop.xlane.xlu1 %729 }
 0x305   : > { %867 = vadd.xlane.f32.xlu1 %v866_v26  ;;  %v753_v7 = vsub.f32 %v1782_v34, %v709_v62  ;;  %v754_v8 = vsub.f32 %v1786_v36, %v709_v62  ;;  %v767_v47 = vsub.f32 %v1846_v2, %v730_v63  ;;  %v768_v48 = vsub.f32 %v1848_v3, %v730_v63 }
 0x307   : > { %v1940_v10 = vpop.eup %1414  ;;  %v789_v11 = vmul.f32 1.442695, %v753_v7  ;;  %v791_v12 = vmul.f32 1.442695, %v754_v8  ;;  %v817_v14 = vmul.f32 1.442695, %v767_v47 }
 0x308   : > { %v1942_v15 = vpop.eup %1416  ;;  %v819_v16 = vmul.f32 1.442695, %v768_v48 }
 0x309   : > { %v1944_v52 = vpop.eup %1418  ;;  %1422 = vpow2.f32 %v789_v11  ;;  %v845_v34 = vadd.f32 %v1942_v15, %v1940_v10 }
 0x30a   : > { %v1948_v53 = vpop.eup %1420  ;;  %1424 = vpow2.f32 %v791_v12 }
 0x30b   : > { %1426 = vpow2.f32 %v817_v14  ;;  %846 = vadd.xlane.f32.xlu0 %v845_v34  ;;  %v869_v36 = vadd.f32 %v1948_v53, %v1944_v52 }
 0x30c   : > { %1428 = vpow2.f32 %v819_v16  ;;  %v706_v2 = vpop.xlane.xlu0 %705  ;;  %v715_v3 = vpop.xlane.xlu1 %714 }
 0x30d   : > { %870 = vadd.xlane.f32.xlu1 %v869_v36  ;;  %v751_v54 = vsub.f32 %v1772_v29, %v706_v2  ;;  %v752_v56 = vsub.f32 %v1776_v31, %v706_v2  ;;  %v757_v19 = vsub.f32 %v1802_v44, %v715_v3  ;;  %v758_v21 = vsub.f32 %v1806_v46, %v715_v3 }
 0x30f   : > { %v1956_v24 = vpop.eup %1422  ;;  %v785_v28 = vmul.f32 1.442695, %v751_v54  ;;  %v787_v30 = vmul.f32 1.442695, %v752_v56  ;;  %v797_v33 = vmul.f32 1.442695, %v757_v19 }
 0x310   : > { %v1958_v40 = vpop.eup %1424  ;;  %v799_v49 = vmul.f32 1.442695, %v758_v21 }
 0x311   : > { %v1960_v51 = vpop.eup %1426  ;;  %1430 = vpow2.f32 %v785_v28  ;;  %v851_v29 = vadd.f32 %v1958_v40, %v1956_v24 }
 0x312   : > { %v1964_v58 = vpop.eup %1428  ;;  %1432 = vpow2.f32 %v787_v30 }
 0x313   : > { %1434 = vpow2.f32 %v797_v33  ;;  %v872_v31 = vadd.f32 %v1964_v58, %v1960_v51 }
 0x314   : > { %1436 = vpow2.f32 %v799_v49  ;;  %v712_v44 = vpop.xlane.xlu1 %711 }
 0x315   : > { %852 = vadd.xlane.f32.xlu1 %v851_v29  ;;  %873 = vadd.xlane.f32.xlu2 %v872_v31  ;;  %v755_v46 = vsub.f32 %v1792_v39, %v712_v44  ;;  %v756_v59 = vsub.f32 %v1796_v41, %v712_v44 }
 0x317   : > { %v1970_v45 = vpop.eup %1430  ;;  %v793_v38 = vmul.f32 1.442695, %v755_v46  ;;  %v795_v50 = vmul.f32 1.442695, %v756_v59 }
 0x318   : > { %v1972_v60 = vpop.eup %1432 }
 0x319   : > { %v1974_v61 = vpop.eup %1434  ;;  %1438 = vpow2.f32 %v793_v38  ;;  %v848_v0 = vadd.f32 %v1972_v60, %v1970_v45 }
 0x31a   : > { %v1978_v1 = vpop.eup %1436  ;;  %1440 = vpow2.f32 %v795_v50 }
 0x31b   : > { %v857_v39 = vadd.f32 %v1978_v1, %v1974_v61 }
 0x31d   : > { %849 = vadd.xlane.f32.xlu1 %v848_v0  ;;  %858 = vadd.xlane.f32.xlu2 %v857_v39 }
 0x31f   : > { %v1982_v41 = vpop.eup %1438 }
 0x320   : > { %v1984_v25 = vpop.eup %1440 }
 0x321   : > { %v854_v26 = vadd.f32 %v1984_v25, %v1982_v41 }
 0x325   : > { %855 = vadd.xlane.f32.xlu2 %v854_v26 }
 0x344   : > { %v877_v7 = vpop.xlane.xlu2 %876 }
 0x34c   : > { %v880_v63 = vpop.xlane.xlu0 %879 }
 0x354   : > { %v883_v47 = vpop.xlane.xlu0 %882 }
 0x35c   : > { %v886_v62 = vpop.xlane.xlu1 %885 }
 0x364   : > { %v889_v8 = vpop.xlane.xlu1 %888 }
 0x365   : > { %1442 = vrcp.f32 %v889_v8 }
 0x366   : > { %1444 = vrcp.f32 %v886_v62 }
 0x36b   : > { %v1443_v11 = vpop.eup %1442 }
 0x36c   : > { %v892_v48 = vpop.xlane.xlu2 %891  ;;  %v1445_v12 = vpop.eup %1444  ;;  %v937_v16 = vmul.f32 %v1443_v11, %v1896_v9  ;;  %v938_v36 = vmul.f32 %v1443_v11, %v1900_v13 }
 0x36d   : > { %1446 = vrcp.f32 %v892_v48  ;;  %v935_v19 = vmul.f32 %v1445_v12, %v1888_v42  ;;  %v936_v21 = vmul.f32 %v1445_v12, %v1890_v4 }
 0x36e   : > { %1448 = vrcp.f32 %v883_v47 }
 0x36f   : > { %1450 = vrcp.f32 %v880_v63 }
 0x370   : > { %1452 = vrcp.f32 %v877_v7 }
 0x373   : > { %v1447_v14 = vpop.eup %1446 }
 0x374   : > { %v939_v34 = vmul.f32 %v1447_v14, %v1904_v18  ;;  %v940_v2 = vmul.f32 %v1447_v14, %v1910_v22  ;;  %v1449_v3 = vpop.eup %1448 }
 0x375   : > { %v1451_v28 = vpop.eup %1450  ;;  %v933_v33 = vmul.f32 %v1449_v3, %v1880_v37  ;;  %v934_v9 = vmul.f32 %v1449_v3, %v1882_v55  ;;  %v865_v37 = vpop.xlane.xlu0 %864 }
 0x376   : > { %v955_v54 = vpack.c.bf16 %v939_v34, %v937_v16  ;;  %v956_v56 = vpack.c.bf16 %v940_v2, %v938_v36  ;;  %v1453_v18 = vpop.eup %1452  ;;  %v931_v22 = vmul.f32 %v1451_v28, %v1872_v27  ;;  %v932_v29 = vmul.f32 %v1451_v28, %v1874_v32 }
 0x377   : > { %v953_v49 = vpack.c.bf16 %v935_v19, %v933_v33  ;;  %v954_v13 = vpack.c.bf16 %v936_v21, %v934_v9  ;;  %v929_v42 = vmul.f32 %v1453_v18, %v1864_v17  ;;  %v930_v4 = vmul.f32 %v1453_v18, %v1866_v20 }
 0x378   : > { %v868_v30 = vpop.xlane.xlu1 %867  ;;  %973 = vmatpush.bf16.msrb.mxu2 %v955_v54  ;;  %987 = vmatpush.bf16.msrb.mxu3 %v956_v56 }
 0x379   : > { %v951_v31 = vpack.c.bf16 %v931_v22, %v929_v42  ;;  %v952_v44 = vpack.c.bf16 %v932_v29, %v930_v4 }
 0x37c   : > { %974 = vmatpush.bf16.msrb.mxu2 %v953_v49  ;;  %988 = vmatpush.bf16.msrb.mxu3 %v954_v13 }
 0x37d   : > { %v862_v27 = vpop.xlane.xlu0 %861 }
 0x380   : > { %975 = vmatpush.bf16.msrb.mxu2 %v951_v31  ;;  %989 = vmatpush.bf16.msrb.mxu3 %v952_v44  ;;  %v871_v46 = vpop.xlane.xlu1 %870 }
 0x381   : > { %1454 = vrcp.f32 %v871_v46 }
 0x382   : > { %1456 = vrcp.f32 %v868_v30 }
 0x385   : > { %v847_v16 = vpop.xlane.xlu0 %846 }
 0x387   : > { %v1455_v32 = vpop.eup %1454 }
 0x388   : > { %v874_v55 = vpop.xlane.xlu2 %873  ;;  %v853_v59 = vpop.xlane.xlu1 %852  ;;  %v925_v20 = vmul.f32 %v1455_v32, %v1944_v52  ;;  %v926_v39 = vmul.f32 %v1455_v32, %v1948_v53 }
 0x389   : > { %1458 = vrcp.f32 %v874_v55  ;;  %v1457_v38 = vpop.eup %1456 }
 0x38a   : > { %1460 = vrcp.f32 %v865_v37  ;;  %v923_v8 = vmul.f32 %v1457_v38, %v1928_v5  ;;  %v924_v47 = vmul.f32 %v1457_v38, %v1932_v6 }
 0x38b   : > { %1462 = vrcp.f32 %v862_v27 }
 0x38f   : > { %v1459_v50 = vpop.eup %1458 }
 0x390   : > { %v859_v17 = vpop.xlane.xlu2 %858  ;;  %v927_v0 = vmul.f32 %v1459_v50, %v1960_v51  ;;  %v928_v26 = vmul.f32 %v1459_v50, %v1964_v58  ;;  %v1461_v62 = vpop.eup %1460 }
 0x391   : > { %1464 = vrcp.f32 %v859_v17  ;;  %v1463_v48 = vpop.eup %1462  ;;  %v921_v11 = vmul.f32 %v1461_v62, %v1912_v23  ;;  %v922_v52 = vmul.f32 %v1461_v62, %v1916_v35  ;;  %v850_v51 = vpop.xlane.xlu1 %849 }
 0x392   : > { %v949_v63 = vpack.c.bf16 %v927_v0, %v925_v20  ;;  %v950_v7 = vpack.c.bf16 %v928_v26, %v926_v39  ;;  %1466 = vrcp.f32 %v853_v59  ;;  %v919_v14 = vmul.f32 %v1463_v48, %v1924_v57 }
 0x393   : > { %v947_v12 = vpack.c.bf16 %v923_v8, %v921_v11  ;;  %v948_v53 = vpack.c.bf16 %v924_v47, %v922_v52  ;;  %1468 = vrcp.f32 %v850_v51  ;;  %v920_v23 = vmul.f32 %v1463_v48, %v1926_v43 }
 0x394   : > { %976 = vmatpush.bf16.msrb.mxu2 %v949_v63  ;;  %990 = vmatpush.bf16.msrb.mxu3 %v950_v7 }
 0x397   : > { %v1465_v58 = vpop.eup %1464 }
 0x398   : > { %v856_v5 = vpop.xlane.xlu2 %855  ;;  %977 = vmatpush.bf16.msrb.mxu2 %v947_v12  ;;  %991 = vmatpush.bf16.msrb.mxu3 %v948_v53  ;;  %v917_v6 = vmul.f32 %v1465_v58, %v1974_v61  ;;  %v918_v34 = vmul.f32 %v1465_v58, %v1978_v1  ;;  %v1467_v57 = vpop.eup %1466 }
 0x399   : > { %1470 = vrcp.f32 %v856_v5  ;;  %v1469_v2 = vpop.eup %1468  ;;  %v913_v54 = vmul.f32 %v1467_v57, %v1956_v24  ;;  %v914_v1 = vmul.f32 %v1467_v57, %v1958_v40  ;;  %v1268_v24 = vld [vmem:[%s960_s22] sm:$0xf] }
 0x39a   : > { %v945_v35 = vpack.c.bf16 %v919_v14, %v917_v6  ;;  %v946_v36 = vpack.c.bf16 %v920_v23, %v918_v34  ;;  %1472 = vrcp.f32 %v847_v16  ;;  %v911_v28 = vmul.f32 %v1469_v2, %v1970_v45  ;;  %v964_v45 = vld [vmem:[#allocation4] sm:$0xff] }
 0x39b   : > { %v912_v30 = vmul.f32 %v1469_v2, %v1972_v60 }
 0x39c   : > { %978 = vmatpush.bf16.msrb.mxu2 %v945_v35  ;;  %992 = vmatpush.bf16.msrb.mxu3 %v946_v36 }
 0x39f   : > { %v1471_v3 = vpop.eup %1470 }
 0x3a0   : > { %v915_v61 = vmul.f32 %v1471_v3, %v1982_v41  ;;  %v916_v43 = vmul.f32 %v1471_v3, %v1984_v25  ;;  %v1473_v56 = vpop.eup %1472  ;;  %v1286_v41 = vld [vmem:[%s960_s22 + $0x4] sm:$0xf0] }
 0x3a1   : > { %v909_v33 = vmul.f32 %v1473_v56, %v1940_v10  ;;  %v910_v9 = vmul.f32 %v1473_v56, %v1942_v15  ;;  %v1269_v49 = vor.u32 %v1286_v41, %v1268_v24  ;;  %v963_v25 = vld [vmem:[#allocation4 + $0x10] sm:$0xff]  ;;  %v965_v10 = vld [vmem:[#allocation4 + $0x18] sm:$0xff]  ;;  %v966_v15 = vld [vmem:[#allocation4 + $0x8] sm:$0xff] }
 0x3a2   : > { %v943_v19 = vpack.c.bf16 %v915_v61, %v913_v54  ;;  %v944_v21 = vpack.c.bf16 %v916_v43, %v914_v1 }
 0x3a3   : > { %v941_v18 = vpack.c.bf16 %v911_v28, %v909_v33  ;;  %v942_v40 = vpack.c.bf16 %v912_v30, %v910_v9 }
 0x3a4   : > { %979 = vmatpush.bf16.msrb.mxu2 %v943_v19  ;;  %993 = vmatpush.bf16.msrb.mxu3 %v944_v21 }
 0x3a8   : > { %980 = vmatpush.bf16.msrb.mxu2 %v941_v18  ;;  %994 = vmatpush.bf16.msrb.mxu3 %v942_v40 }
 0x3ab   : > { %981 = vmatmul.bf16.vlgmr.msrb.gmra.mxu2 %v1269_v49  ;;  %995 = vmatmul.bf16.vlgmr.msrb.gmra.mxu3 %v1269_v49 }
 0x42e   : > { %v982_v13 = vpop.f32.mrf.mxu2  ;;  %v996_v60 = vpop.f32.mrf.mxu3 }
 0x42f   : > { %v1001_v22 = vadd.f32 %v982_v13, %v963_v25  ;;  %v1002_v29 = vadd.f32 %v996_v60, %v964_v45 }
 0x431   : > { %1005 = vst [vmem:[#allocation4 + $0x10] sm:$0xff] %v1001_v22 }
 0x432   : > { %1006 = vst [vmem:[#allocation4] sm:$0xff] %v1002_v29 }
 0x436   : > { %v984_v42 = vpop.f32.mrf.mxu2  ;;  %v998_v4 = vpop.f32.mrf.mxu3  ;;  %1012 = sbr.rel (%p1270_p0) target bundleno = 1365 (0x555), region = 56 }
 0x437   : > { %v1003_v31 = vadd.f32 %v984_v42, %v965_v10  ;;  %v1004_v44 = vadd.f32 %v998_v4, %v966_v15 }
 0x439   : > { %1007 = vst [vmem:[#allocation4 + $0x18] sm:$0xff] %v1003_v31 }
 0x43a   : > { %1008 = vst [vmem:[#allocation4 + $0x8] sm:$0xff] %v1004_v44 }
 0x43b   : > { %v1013_v37 = vld [vmem:[#allocation4 + $0x10] sm:$0xff]  ;;  %v1014_v46 = vld [vmem:[#allocation4] sm:$0xff]  ;;  %v1080_v3 = vstv %s1079_s29  ;;  %v1075_v56 = vld [vmem:[%s1706_s6] sm:$0xff] }
 0x43c   : > { %v1017_v55 = vmax.f32 %v1013_v37, %v1014_v46  ;;  %v1076_v19 = vld [vmem:[%s1706_s6 + $0x8] sm:$0xff]  ;;  %v1077_v60 = vld [vmem:[%s1706_s6 + $0x10] sm:$0xff]  ;;  %v1078_v22 = vld [vmem:[%s1706_s6 + $0x18] sm:$0xff] }
 0x43e   : > { %1018 = vmax.xlane.f32.xlu0 %v1017_v55 }
 0x440   : > { %v1015_v27 = vld [vmem:[#allocation4 + $0x18] sm:$0xff] }
 0x441   : > { %v1016_v59 = vld [vmem:[#allocation4 + $0x8] sm:$0xff] }
 0x442   : > { %v1020_v32 = vmax.f32 %v1015_v27, %v1016_v59 }
 0x446   : > { %1021 = vmax.xlane.f32.xlu0 %v1020_v32 }
 0x4b1   : > { %v1019_v38 = vpop.xlane.xlu0 %1018 }
 0x4b2   : > { %v1023_v50 = vsub.f32 %v1013_v37, %v1019_v38  ;;  %v1024_v17 = vsub.f32 %v1014_v46, %v1019_v38 }
 0x4b4   : > { %v1027_v20 = vmul.f32 1.442695, %v1023_v50  ;;  %v1029_v0 = vmul.f32 1.442695, %v1024_v17 }
 0x4b6   : > { %1474 = vpow2.f32 %v1027_v20 }
 0x4b7   : > { %1476 = vpow2.f32 %v1029_v0 }
 0x4b9   : > { %v1022_v39 = vpop.xlane.xlu0 %1021 }
 0x4ba   : > { %v1025_v26 = vsub.f32 %v1015_v27, %v1022_v39  ;;  %v1026_v62 = vsub.f32 %v1016_v59, %v1022_v39 }
 0x4bc   : > { %v1475_v63 = vpop.eup %1474  ;;  %v1031_v7 = vmul.f32 1.442695, %v1025_v26  ;;  %v1033_v8 = vmul.f32 1.442695, %v1026_v62 }
 0x4bd   : > { %v1477_v47 = vpop.eup %1476 }
 0x4be   : > { %1478 = vpow2.f32 %v1031_v7  ;;  %v1035_v48 = vadd.f32 %v1477_v47, %v1475_v63 }
 0x4bf   : > { %1480 = vpow2.f32 %v1033_v8 }
 0x4c0   : > { %1036 = vadd.xlane.f32.xlu1 %v1035_v48 }
 0x4c4   : > { %v1479_v11 = vpop.eup %1478 }
 0x4c5   : > { %v1481_v52 = vpop.eup %1480 }
 0x4c6   : > { %v1038_v51 = vadd.f32 %v1481_v52, %v1479_v11 }
 0x4c8   : > { %1039 = vadd.xlane.f32.xlu1 %v1038_v51 }
 0x533   : > { %v1037_v12 = vpop.xlane.xlu1 %1036 }
 0x534   : > { %1482 = vrcp.f32 %v1037_v12  ;;  %v1052_v5 = vand.u32 2147483648, %v1037_v12  ;;  %v1050_v34 = vand.u32 2147483647, %v1037_v12  ;;  %vm1046_vm12 = vweird.f32 %v1037_v12 }
 0x536   : > { %v1053_v36 = vor.u32 1.1754944e-38, %v1052_v5  ;;  %vm1051_vm14 = vcmp.eq.f32.partialorder %v1050_v34, 8.507059e+37 }
 0x53a   : > { %v1483_v53 = vpop.eup %1482 }
 0x53b   : > { %v1042_v58 = vmul.f32 %v1483_v53, %v1037_v12  ;;  %v1040_v14 = vpop.xlane.xlu1 %1039  ;;  %vm1047_vm11 = vweird.f32 %v1483_v53 }
 0x53c   : > { %1484 = vrcp.f32 %v1040_v14  ;;  %vm1048_vm13 = vmor %vm1046_vm12, %vm1047_vm11  ;;  %v1065_v21 = vand.u32 2147483647, %v1040_v14  ;;  %v1067_v28 = vand.u32 2147483648, %v1040_v14  ;;  %vm1061_vm0 = vweird.f32 %v1040_v14 }
 0x53d   : > { %v1043_v16 = vsub.f32 1.0, %v1042_v58 }
 0x53e   : > { %v1068_v40 = vor.u32 1.1754944e-38, %v1067_v28  ;;  %vm1066_vm2 = vcmp.eq.f32.partialorder %v1065_v21, 8.507059e+37 }
 0x53f   : > { %v1044_v6 = vmul.f32 %v1483_v53, %v1043_v16 }
 0x541   : > { %v1045_v23 = vadd.f32 %v1483_v53, %v1044_v6 }
 0x542   : > { %v1485_v35 = vpop.eup %1484 }
 0x543   : > { %v1049_v57 = vsel %vm1048_vm13, %v1483_v53, %v1045_v23  ;;  %v1057_v2 = vmul.f32 %v1485_v35, %v1040_v14  ;;  %vm1062_vm15 = vweird.f32 %v1485_v35 }
 0x544   : > { %v1054_v54 = vsel %vm1051_vm14, %v1053_v36, %v1049_v57  ;;  %vm1063_vm1 = vmor %vm1061_vm0, %vm1062_vm15 }
 0x545   : > { %v1071_v61 = vmul.f32 %v1475_v63, %v1054_v54  ;;  %v1072_v1 = vmul.f32 %v1477_v47, %v1054_v54  ;;  %v1058_v43 = vsub.f32 1.0, %v1057_v2 }
 0x547   : > { %v1081_v30 = vmul.f32 %v1080_v3, %v1071_v61  ;;  %v1082_v33 = vmul.f32 %v1080_v3, %v1072_v1  ;;  %v1059_v9 = vmul.f32 %v1485_v35, %v1058_v43 }
 0x549   : > { %v1085_v24 = vadd.f32 %v1081_v30, %v1075_v56  ;;  %v1086_v41 = vadd.f32 %v1082_v33, %v1076_v19  ;;  %v1060_v18 = vadd.f32 %v1485_v35, %v1059_v9 }
 0x54b   : > { %1089 = vst [vmem:[%s1713_s13] sm:$0xff] %v1085_v24  ;;  %v1064_v49 = vsel %vm1063_vm1, %v1485_v35, %v1060_v18 }
 0x54c   : > { %1090 = vst [vmem:[%s1713_s13 + $0x8] sm:$0xff] %v1086_v41  ;;  %v1069_v25 = vsel %vm1066_vm2, %v1068_v40, %v1064_v49 }
 0x54d   : > { %v1073_v45 = vmul.f32 %v1479_v11, %v1069_v25  ;;  %v1074_v13 = vmul.f32 %v1481_v52, %v1069_v25 }
 0x54f   : > { %v1083_v29 = vmul.f32 %v1080_v3, %v1073_v45  ;;  %v1084_v10 = vmul.f32 %v1080_v3, %v1074_v13 }
 0x551   : > { %v1087_v15 = vadd.f32 %v1083_v29, %v1077_v60  ;;  %v1088_v42 = vadd.f32 %v1084_v10, %v1078_v22 }
 0x553   : > { %1091 = vst [vmem:[%s1713_s13 + $0x10] sm:$0xff] %v1087_v15 }
 0x554   : > { %1092 = vst [vmem:[%s1713_s13 + $0x18] sm:$0xff] %v1088_v42 }
 0x555 PF: > { %s1287_s20 = sshll.u32 %s1568_s30, 5  ;;  %s1106_s11 = sshll.u32 %s1713_s13, 4  ;;  %s1107_s11 = int_to_ptr.vmem [resolvable:$true] %s1106_s11 }
 0x556   : > { %s1105_s25 = scalar_lea.hbm %s2083_s7, %s1287_s20  ;;  %s1094_s6 = scalar_lea.sflag [#allocation7], %s297_s19 }
 0x557   : > { %s1108_s16 = sshll.u32 %s1105_s25, 4  ;;  %s1506_s30 = scalar_lea.hbm %s2083_s7, 64  ;;  %s1109_s16 = int_to_ptr.hbm [resolvable:$true] %s1108_s16 }
 0x558   : > { %s1500_s17 = sshra.s32 %s1109_s16, 4  ;;  %s1501_s17 = int_to_ptr.hbm [resolvable:$true] %s1500_s17 }
 0x559   : > { %s1502_s21 = scalar_lea.hbm %s1501_s17, 32  ;;  %p1507_p5 = scmp.lt.s32.totalorder %s1501_s17, %s2083_s7 }
 0x55a   : > { %p1503_p1 = scmp.ne.s32.totalorder %s1501_s17, %s1502_s21  ;;  %p1508_p6 = scmp.lt.s32.totalorder %s1506_s30, %s1502_s21 }
 0x55c   : > { %p1504_p2 = pnand %p1503_p1, %p1678_p3  ;;  %p1509_p7 = por %p1508_p6, %p1507_p5 }
 0x55e   : > { %p1505_p4 = pneg %p1504_p2 }
 0x560   : > { %p1510_p8 = pnand %p1509_p7, %p1505_p4 }
 0x562   : > { %1513 = shalt.err (!%p1510_p8)
}
 0x563   : > { %s1584_s13 = smov 256   ;;  %s1585_s19 = smov 16  }
 0x564   : > { %1290 = dma.vmem_to_hbm [thread:$0]  (%p1678_p3), %s1107_s11, 512, %s1109_s16, %s1094_s6, %s1584_s13, %s1584_s13, %s1585_s19  }
 0x565 PF: > { %p1296_p10 = scmp.ge.s32.totalorder %s1580_s10, 2  ;;  %s1123_s20 = sand.u32 1, %s1552_s26  }
 0x566   : > { %s1124_s0 = scalar_lea.sflag [#allocation7], %s1123_s20 }
 0x567   : > { %p1293_p11 = pnand %p1296_p10, %p1688_p9 }
 0x569   : > { %p1294_p12 = pneg %p1293_p11 }
 0x56b   : > { %1547 = dma.done.wait (%p1294_p12), %s1124_s0, 512  }
 0x56c   : > { %1549 = vsyncadd (%p1294_p12), %s1124_s0, 4294966784  ;;  %s21_s10 = sadd.s32 1, %s1580_s10   ;;  %s2090_s14 = sld [smem:[#allocation9_spill]] }
 0x56d   : > { %p18_p13 = scmp.ge.s32.totalorder %s21_s10, 6   ;;  %s2091_s26 = smov %s1556_s27 }
 0x56e   : > { %s2092_s27 = smov %s1560_s28  ;;  %s2093_s28 = smov %s1696_s18 }
 0x56f   : > { %s2094_s29 = smov %s1572_s8  ;;  %s2095_s30 = smov %s1576_s9 }
 0x570   : > { %s2096_s8 = smov %s2099_s12  ;;  %20 = sbr.rel (!%p18_p13) target bundleno = 8 (0x8), region = 96 }
 0x572   : > { %s2097_s9 = smov %s2090_s14 }
 0x575   :  { %1130 = vsyncpa [#allocation7], 1 }
 0x576   :  { %1132 = vsyncpa [#allocation7 + $0x1], 1 }

</bundles_post_ra>
